<compile_context>
chip_gen: v7x
topology: tpu7x:2x2x1
jax: 0.10.0
libtpu: 0.0.40
codegen_flags: <defaults>
</compile_context>

<pallas_src>
import jax
import jax.numpy as jnp
from jax.experimental import pallas as pl
from jax.experimental.pallas import tpu as pltpu

LN_EPS = 1e-5  # torch.nn.LayerNorm default


def plddt_kernel(x_ref, w1t_ref, w2t_ref, w3t_ref, cols_ref, out_ref):
    P = w1t_ref.shape[0]   # proj_dim
    B = w3t_ref.shape[0]   # n_bins

    # [tile_n, D] block -> [D, tile_n]: channels on sublanes, residues on
    # lanes.  One XLU transpose per tile; all subsequent VPU/EUP work and the
    # output store are then fully lane-dense.
    xT = x_ref[...].astype(jnp.float32).T                       # [D, T]

    # --- LayerNorm statistics over channels (sublane axis). ---
    # The affine (gamma/beta) is folded into W1/b1 on the host.
    mean = jnp.mean(xT, axis=0, keepdims=True)                  # [1, T]
    xc = xT - mean
    var = jnp.mean(xc * xc, axis=0, keepdims=True)              # [1, T]
    xn = xc * jax.lax.rsqrt(var + LN_EPS)                       # [D, T]

    # Packed constant columns: [b1_fused | b2 | b3 | bins].
    cols = cols_ref[...].astype(jnp.float32)
    b1 = cols[:P, 0:1]
    b2 = cols[:P, 1:2]
    b3 = cols[:B, 2:3]
    bins = cols[:B, 3:4]

    # --- Linear(single_dim, proj_dim) + ReLU  (as W1_fused^T @ xn^T). ---
    h1 = jnp.dot(w1t_ref[...], xn, preferred_element_type=jnp.float32) + b1
    h1 = jnp.maximum(h1, 0.0)                                   # [P, T]

    # --- Linear(proj_dim, proj_dim) + ReLU. ---
    h2 = jnp.dot(w2t_ref[...], h1, preferred_element_type=jnp.float32) + b2
    h2 = jnp.maximum(h2, 0.0)                                   # [P, T]

    # --- Linear(proj_dim, n_bins) + Softmax over bins (sublane axis). ---
    logits = jnp.dot(w3t_ref[...], h2, preferred_element_type=jnp.float32) + b3
    m = jnp.max(logits, axis=0, keepdims=True)                  # [1, T]
    e = jnp.exp(logits - m)                                     # [B, T]
    p_plddt = e / jnp.sum(e, axis=0, keepdims=True)             # exact norm

    # --- plddt = sum_b p[b] * bins[b]  (VPU mul + sublane reduce). ---
    out_ref[...] = jnp.sum(p_plddt * bins, axis=0,
                           keepdims=True).astype(out_ref.dtype)  # [1, T]

    # TODO(synk): training branch (OneHotNearestBin + F.cross_entropy) is not
    # implemented; OneHotNearestBin's definition is not part of the reference.


def _choose_tile_n(n, max_tile=4096):
    """Large lane-dense tiles amortize per-step overhead; aim for >=2 blocks
    (when N allows it) so the 'parallel' axis can shard across v7x's 2 TCs."""
    target = -(-n // 2)                       # ceil(n / 2)
    t = ((target + 255) // 256) * 256         # round up to multiple of 256
    return int(max(256, min(max_tile, t)))


def plddt_head_forward(single_rep, params, *, tile_n=None):
    """single_rep: [N, single_dim] (f32 or bf16) -> plddt [N, 1] float32."""
    N, single_dim = single_rep.shape
    proj_dim = params["w1"].shape[1]
    n_bins = params["w3"].shape[1]

    if tile_n is None:
        tile_n = _choose_tile_n(N)
    assert tile_n % 128 == 0, "tile_n must be a multiple of 128 (lane width)"
    n_blocks = pl.cdiv(N, tile_n)

    # ---- Cheap host-side parameter prep (tiny arrays only). ----
    g_row = params["ln_g"].reshape(1, single_dim)
    beta_col = params["ln_b"].reshape(single_dim, 1)
    w1t = params["w1"].T                                   # [P, D]
    w1t_fused = (w1t * g_row).astype(jnp.float32)          # fold LN gamma
    b1_fused = w1t @ beta_col + params["b1"].reshape(proj_dim, 1)  # fold LN beta
    w2t = params["w2"].T.astype(jnp.float32)               # [P, P]
    w3t = params["w3"].T.astype(jnp.float32)               # [B, P]

    # Pack the four column vectors into one (R, 4) constant input.
    R = max(proj_dim, n_bins)

    def col(v, rows):
        v = jnp.asarray(v, jnp.float32).reshape(rows, 1)
        return jnp.pad(v, ((0, R - rows), (0, 0)))

    cols = jnp.concatenate(
        [col(b1_fused, proj_dim),
         col(params["b2"], proj_dim),
         col(params["b3"], n_bins),
         col(params["bins"], n_bins)], axis=1)              # [R, 4]

    const = lambda shape: pl.BlockSpec(shape, lambda i: (0, 0))

    out = pl.pallas_call(
        plddt_kernel,
        out_shape=jax.ShapeDtypeStruct((1, N), jnp.float32),
        grid_spec=pltpu.PrefetchScalarGridSpec(
            num_scalar_prefetch=0,
            grid=(n_blocks,),
            in_specs=[
                pl.BlockSpec((tile_n, single_dim), lambda i: (i, 0)),  # x tile
                const((proj_dim, single_dim)),                         # W1^T (LN-fused)
                const((proj_dim, proj_dim)),                           # W2^T
                const((n_bins, proj_dim)),                             # W3^T
                const((R, 4)),                                         # [b1f|b2|b3|bins]
            ],
            out_specs=pl.BlockSpec((1, tile_n), lambda i: (0, i)),     # lane-dense
        ),
        compiler_params=pltpu.CompilerParams(
            dimension_semantics=("parallel",),
            vmem_limit_bytes=32 * 1024 * 1024),
    )(single_rep, w1t_fused, w2t, w3t, cols)

    return out.reshape(N, 1)


def make_params(key, single_dim, proj_dim, n_bins):
    ks = jax.random.split(key, 8)
    scale = 0.1
    return {
        # Non-trivial LN affine so the host-side W1/b1 fold is actually tested.
        "ln_g": 1.0 + scale * jax.random.normal(ks[6], (1, single_dim), jnp.float32),
        "ln_b": scale * jax.random.normal(ks[7], (1, single_dim), jnp.float32),
        # Stored as (in, out); y = x @ W + b (same math as torch Linear with
        # W_torch = W.T), initialized deterministically here.
        "w1": scale * jax.random.normal(ks[0], (single_dim, proj_dim), jnp.float32),
        "b1": scale * jax.random.normal(ks[1], (1, proj_dim), jnp.float32),
        "w2": scale * jax.random.normal(ks[2], (proj_dim, proj_dim), jnp.float32),
        "b2": scale * jax.random.normal(ks[3], (1, proj_dim), jnp.float32),
        "w3": scale * jax.random.normal(ks[4], (proj_dim, n_bins), jnp.float32),
        "b3": scale * jax.random.normal(ks[5], (1, n_bins), jnp.float32),
        "bins": jnp.linspace(0.0, 1.0, n_bins, dtype=jnp.float32).reshape(n_bins, 1),
    }


def plddt_head_ref(single_rep, params):
    """Plain-JAX reference mirroring the PyTorch forward (true_lddt=None)."""
    x = single_rep.astype(jnp.float32)
    mean = jnp.mean(x, axis=-1, keepdims=True)
    var = jnp.mean((x - mean) ** 2, axis=-1, keepdims=True)
    xn = (x - mean) / jnp.sqrt(var + LN_EPS)
    xn = xn * params["ln_g"] + params["ln_b"]
    h1 = jax.nn.relu(xn @ params["w1"] + params["b1"])
    h2 = jax.nn.relu(h1 @ params["w2"] + params["b2"])
    p = jax.nn.softmax(h2 @ params["w3"] + params["b3"], axis=-1)
    return p @ params["bins"]


if __name__ == "__main__":
    num_res, single_dim, proj_dim, n_bins = 200, 32, 32, 16

    key = jax.random.PRNGKey(0)
    k_x, k_p = jax.random.split(key)
    single_rep = jax.random.normal(k_x, (num_res, single_dim), jnp.float32)
    params = make_params(k_p, single_dim, proj_dim, n_bins)

    ref = plddt_head_ref(single_rep, params)

    # Auto-chosen tile (single block here; exercises the OOB-masked tail).
    plddt = jax.block_until_ready(plddt_head_forward(single_rep, params))
    assert plddt.shape == (num_res, 1)
    err = float(jnp.max(jnp.abs(plddt - ref)))
    assert jnp.allclose(plddt, ref, atol=1e-3, rtol=1e-3), f"max abs err {err}"

    # Explicit small tile: multi-step grid + partial last block.
    plddt2 = jax.block_until_ready(
        plddt_head_forward(single_rep, params, tile_n=128))
    err2 = float(jnp.max(jnp.abs(plddt2 - ref)))
    assert jnp.allclose(plddt2, ref, atol=1e-3, rtol=1e-3), f"max abs err {err2}"

    print("KERNEL_OK")
</pallas_src>

<mosaic_0001>
module attributes {stable_mosaic.version = 11 : i64} {
  func.func @plddt_kernel(%arg0: i32, %arg1: memref<256x32xf32, #tpu.memory_space<vmem>>, %arg2: memref<32x32xf32, #tpu.memory_space<vmem>>, %arg3: memref<32x32xf32, #tpu.memory_space<vmem>>, %arg4: memref<16x32xf32, #tpu.memory_space<vmem>>, %arg5: memref<32x4xf32, #tpu.memory_space<vmem>>, %arg6: memref<1x256xf32, #tpu.memory_space<vmem>>) attributes {dimension_semantics = [#tpu.dimension_semantics<parallel>], iteration_bounds = array<i64: 1>, scalar_prefetch = 0 : i64, scratch_operands = 0 : i64, tpu.core_type = #tpu.core_type<tc>, window_params = [{transform_indices = @transform_0, window_bounds = array<i64: 256, 32>}, {pipeline_mode = #tpu.pipeline_mode<synchronous>, transform_indices = @transform_1, window_bounds = array<i64: 32, 32>}, {pipeline_mode = #tpu.pipeline_mode<synchronous>, transform_indices = @transform_2, window_bounds = array<i64: 32, 32>}, {pipeline_mode = #tpu.pipeline_mode<synchronous>, transform_indices = @transform_3, window_bounds = array<i64: 16, 32>}, {pipeline_mode = #tpu.pipeline_mode<synchronous>, transform_indices = @transform_4, window_bounds = array<i64: 32, 4>}, {transform_indices = @transform_5, window_bounds = array<i64: 1, 256>}]} {
    %c0 = arith.constant 0 : index
    %c0_0 = arith.constant 0 : index
    %0 = vector.load %arg1[%c0, %c0_0] : memref<256x32xf32, #tpu.memory_space<vmem>>, vector<256x32xf32>
    %1 = tpu.transpose %0, [1, 0] : vector<256x32xf32> -> vector<32x256xf32>
    %cst = arith.constant dense<0.000000e+00> : vector<256xf32>
    %2 = vector.multi_reduction <add>, %1, %cst [0] : vector<32x256xf32> to vector<256xf32>
    %3 = vector.shape_cast %2 : vector<256xf32> to vector<1x256xf32>
    %cst_1 = arith.constant 3.200000e+01 : f32
    %4 = vector.broadcast %cst_1 : f32 to vector<1x256xf32>
    %5 = arith.divf %3, %4 : vector<1x256xf32>
    %6 = vector.broadcast %5 : vector<1x256xf32> to vector<32x256xf32>
    %7 = arith.subf %1, %6 : vector<32x256xf32>
    %8 = arith.mulf %7, %7 : vector<32x256xf32>
    %cst_2 = arith.constant dense<0.000000e+00> : vector<256xf32>
    %9 = vector.multi_reduction <add>, %8, %cst_2 [0] : vector<32x256xf32> to vector<256xf32>
    %10 = vector.shape_cast %9 : vector<256xf32> to vector<1x256xf32>
    %cst_3 = arith.constant 3.200000e+01 : f32
    %11 = vector.broadcast %cst_3 : f32 to vector<1x256xf32>
    %12 = arith.divf %10, %11 : vector<1x256xf32>
    %cst_4 = arith.constant 9.99999974E-6 : f32
    %13 = vector.broadcast %cst_4 : f32 to vector<1x256xf32>
    %14 = arith.addf %12, %13 : vector<1x256xf32>
    %15 = math.rsqrt %14 : vector<1x256xf32>
    %16 = vector.broadcast %15 : vector<1x256xf32> to vector<32x256xf32>
    %17 = arith.mulf %7, %16 : vector<32x256xf32>
    %c0_5 = arith.constant 0 : index
    %c0_6 = arith.constant 0 : index
    %18 = vector.load %arg5[%c0_5, %c0_6] : memref<32x4xf32, #tpu.memory_space<vmem>>, vector<32x4xf32>
    %19 = vector.extract_strided_slice %18 {offsets = [0, 0], sizes = [32, 1], strides = [1, 1]} : vector<32x4xf32> to vector<32x1xf32>
    %20 = vector.extract_strided_slice %18 {offsets = [0, 1], sizes = [32, 1], strides = [1, 1]} : vector<32x4xf32> to vector<32x1xf32>
    %21 = vector.extract_strided_slice %18 {offsets = [0, 2], sizes = [16, 1], strides = [1, 1]} : vector<32x4xf32> to vector<16x1xf32>
    %22 = vector.extract_strided_slice %18 {offsets = [0, 3], sizes = [16, 1], strides = [1, 1]} : vector<32x4xf32> to vector<16x1xf32>
    %c0_7 = arith.constant 0 : index
    %c0_8 = arith.constant 0 : index
    %23 = vector.load %arg2[%c0_7, %c0_8] : memref<32x32xf32, #tpu.memory_space<vmem>>, vector<32x32xf32>
    %cst_9 = arith.constant dense<0.000000e+00> : vector<32x256xf32>
    %24 = tpu.matmul %23, %17, %cst_9 {dimension_numbers = #tpu.dot_dimension_numbers<[1], [0], [0], [1], [0, 0, 1, 1], [], []>} : vector<32x32xf32>, vector<32x256xf32>, vector<32x256xf32> -> vector<32x256xf32>
    %25 = vector.broadcast %19 : vector<32x1xf32> to vector<32x256xf32>
    %26 = arith.addf %24, %25 : vector<32x256xf32>
    %cst_10 = arith.constant 0.000000e+00 : f32
    %27 = vector.broadcast %cst_10 : f32 to vector<32x256xf32>
    %28 = arith.maximumf %26, %27 : vector<32x256xf32>
    %c0_11 = arith.constant 0 : index
    %c0_12 = arith.constant 0 : index
    %29 = vector.load %arg3[%c0_11, %c0_12] : memref<32x32xf32, #tpu.memory_space<vmem>>, vector<32x32xf32>
    %cst_13 = arith.constant dense<0.000000e+00> : vector<32x256xf32>
    %30 = tpu.matmul %29, %28, %cst_13 {dimension_numbers = #tpu.dot_dimension_numbers<[1], [0], [0], [1], [0, 0, 1, 1], [], []>} : vector<32x32xf32>, vector<32x256xf32>, vector<32x256xf32> -> vector<32x256xf32>
    %31 = vector.broadcast %20 : vector<32x1xf32> to vector<32x256xf32>
    %32 = arith.addf %30, %31 : vector<32x256xf32>
    %cst_14 = arith.constant 0.000000e+00 : f32
    %33 = vector.broadcast %cst_14 : f32 to vector<32x256xf32>
    %34 = arith.maximumf %32, %33 : vector<32x256xf32>
    %c0_15 = arith.constant 0 : index
    %c0_16 = arith.constant 0 : index
    %35 = vector.load %arg4[%c0_15, %c0_16] : memref<16x32xf32, #tpu.memory_space<vmem>>, vector<16x32xf32>
    %cst_17 = arith.constant dense<0.000000e+00> : vector<16x256xf32>
    %36 = tpu.matmul %35, %34, %cst_17 {dimension_numbers = #tpu.dot_dimension_numbers<[1], [0], [0], [1], [0, 0, 1, 1], [], []>} : vector<16x32xf32>, vector<32x256xf32>, vector<16x256xf32> -> vector<16x256xf32>
    %37 = vector.broadcast %21 : vector<16x1xf32> to vector<16x256xf32>
    %38 = arith.addf %36, %37 : vector<16x256xf32>
    %cst_18 = arith.constant dense<0xFF800000> : vector<256xf32>
    %39 = vector.multi_reduction <maximumf>, %38, %cst_18 [0] : vector<16x256xf32> to vector<256xf32>
    %40 = vector.shape_cast %39 : vector<256xf32> to vector<1x256xf32>
    %41 = vector.broadcast %40 : vector<1x256xf32> to vector<16x256xf32>
    %42 = arith.subf %38, %41 : vector<16x256xf32>
    %43 = math.exp %42 : vector<16x256xf32>
    %cst_19 = arith.constant dense<0.000000e+00> : vector<256xf32>
    %44 = vector.multi_reduction <add>, %43, %cst_19 [0] : vector<16x256xf32> to vector<256xf32>
    %45 = vector.shape_cast %44 : vector<256xf32> to vector<1x256xf32>
    %46 = vector.broadcast %45 : vector<1x256xf32> to vector<16x256xf32>
    %47 = arith.divf %43, %46 : vector<16x256xf32>
    %48 = vector.broadcast %22 : vector<16x1xf32> to vector<16x256xf32>
    %49 = arith.mulf %47, %48 : vector<16x256xf32>
    %cst_20 = arith.constant dense<0.000000e+00> : vector<256xf32>
    %50 = vector.multi_reduction <add>, %49, %cst_20 [0] : vector<16x256xf32> to vector<256xf32>
    %51 = vector.shape_cast %50 : vector<256xf32> to vector<1x256xf32>
    %c0_21 = arith.constant 0 : index
    %c0_22 = arith.constant 0 : index
    %52 = vector.load %arg6[%c0_21, %c0_22] : memref<1x256xf32, #tpu.memory_space<vmem>>, vector<1x256xf32>
    tpu.vector_store %arg6[%c0_21, %c0_22], %51 {strides = array<i32>} : memref<1x256xf32, #tpu.memory_space<vmem>>, vector<1x256xf32>,
    return
  }
  func.func @transform_0(%arg0: i32) -> (i32, i32) {
    %c0_i32 = arith.constant 0 : i32
    %c0_i32_0 = arith.constant 0 : i32
    return %arg0, %c0_i32 : i32, i32
  }
  func.func @transform_1(%arg0: i32) -> (i32, i32) {
    %c0_i32 = arith.constant 0 : i32
    %c0_i32_0 = arith.constant 0 : i32
    %c0_i32_1 = arith.constant 0 : i32
    return %c0_i32, %c0_i32_0 : i32, i32
  }
  func.func @transform_2(%arg0: i32) -> (i32, i32) {
    %c0_i32 = arith.constant 0 : i32
    %c0_i32_0 = arith.constant 0 : i32
    %c0_i32_1 = arith.constant 0 : i32
    return %c0_i32, %c0_i32_0 : i32, i32
  }
  func.func @transform_3(%arg0: i32) -> (i32, i32) {
    %c0_i32 = arith.constant 0 : i32
    %c0_i32_0 = arith.constant 0 : i32
    %c0_i32_1 = arith.constant 0 : i32
    return %c0_i32, %c0_i32_0 : i32, i32
  }
  func.func @transform_4(%arg0: i32) -> (i32, i32) {
    %c0_i32 = arith.constant 0 : i32
    %c0_i32_0 = arith.constant 0 : i32
    %c0_i32_1 = arith.constant 0 : i32
    return %c0_i32, %c0_i32_0 : i32, i32
  }
  func.func @transform_5(%arg0: i32) -> (i32, i32) {
    %c0_i32 = arith.constant 0 : i32
    %c0_i32_0 = arith.constant 0 : i32
    return %c0_i32, %arg0 : i32, i32
  }
}

</mosaic_0001>

<bundles_post_ra>
// kernel: tpu_custom_call.1
= control target key start
LH: loop header
LB: loop body
LE: loop exit
PB: predicated region body
PF: predicated region fallthrough
CT: control target
= control target key end

     0   :  { %s975_s0 = inlined_call_operand.vmem [shape: f32[200,32], index: 0, kind: input, shape index: {}]   ;;  %s976_s1 = inlined_call_operand.vmem [shape: f32[32,32], index: 1, kind: input, shape index: {}]   ;;  %s977_s2 = inlined_call_operand.vmem [shape: f32[32,32], index: 2, kind: input, shape index: {}]   ;;  %s978_s3 = inlined_call_operand.vmem [shape: f32[16,32], index: 3, kind: input, shape index: {}]   ;;  %s979_s4 = inlined_call_operand.vmem [shape: f32[32,4], index: 4, kind: input, shape index: {}]   ;;  %s980_s5 = inlined_call_operand.hbm [shape: f32[1,200], index: 5, kind: output, shape index: {}]  }
   0x1   :  { %v37_v0 = vld [vmem:[%s975_s0 + $0x80] sm:$0xff]  ;;  %v38_v2 = vld [vmem:[%s975_s0 + $0x88] sm:$0xff]  ;;  %v39_v4 = vld [vmem:[%s975_s0 + $0x90] sm:$0xff] }
   0x2   :  { %v21_v1 = vld [vmem:[%s975_s0] sm:$0xff]  ;;  %85 = vxpose.xlu0.b32.start [1/16] (narrow) %v37_v0, 32  ;;  %v22_v3 = vld [vmem:[%s975_s0 + $0x8] sm:$0xff]  ;;  %v23_v5 = vld [vmem:[%s975_s0 + $0x10] sm:$0xff] }
   0x3   :  { %53 = vxpose.xlu1.b32.start [1/16] (narrow) %v21_v1, 32  ;;  %v40_v6 = vld [vmem:[%s975_s0 + $0x98] sm:$0xff] }
   0x4   :  { %v24_v7 = vld [vmem:[%s975_s0 + $0x18] sm:$0xff] }
   0x6   :  { %86 = vxpose.xlu0.b32.cont [2/16] (narrow) %v38_v2, 32 }
   0x7   :  { %54 = vxpose.xlu1.b32.cont [2/16] (narrow) %v22_v3, 32 }
   0xa   :  { %87 = vxpose.xlu0.b32.cont [3/16] (narrow) %v39_v4, 32 }
   0xb   :  { %55 = vxpose.xlu1.b32.cont [3/16] (narrow) %v23_v5, 32 }
   0xc   :  { %10 = vsyncpa [#allocation3], 0  ;;  %v41_v8 = vld [vmem:[%s975_s0 + $0xa0] sm:$0xff]  ;;  %v42_v10 = vld [vmem:[%s975_s0 + $0xa8] sm:$0xff]  ;;  %v748_v32 = vmov 0.0   ;;  %v749_v34 = vmov 0  }
   0xd   :  { %v25_v9 = vld [vmem:[%s975_s0 + $0x20] sm:$0xff]  ;;  %v26_v11 = vld [vmem:[%s975_s0 + $0x28] sm:$0xff]  ;;  %v43_v12 = vld [vmem:[%s975_s0 + $0xb0] sm:$0xff]  ;;  %291 = vmatprep.mubr.f32.mxu0 %v748_v32  ;;  %420 = vmatprep.mubr.f32.mxu1 %v748_v32  ;;  %vm214_vm0 = vcmask 261120  }
   0xe   :  { %88 = vxpose.xlu0.b32.cont [4/16] (narrow) %v40_v6, 32  ;;  %v27_v13 = vld [vmem:[%s975_s0 + $0x30] sm:$0xff]  ;;  %v44_v14 = vld [vmem:[%s975_s0 + $0xb8] sm:$0xff]  ;;  %v45_v16 = vld [vmem:[%s975_s0 + $0xc0] sm:$0xff] }
   0xf   :  { %56 = vxpose.xlu1.b32.cont [4/16] (narrow) %v24_v7, 32  ;;  %v28_v15 = vld [vmem:[%s975_s0 + $0x38] sm:$0xff]  ;;  %v29_v17 = vld [vmem:[%s975_s0 + $0x40] sm:$0xff]  ;;  %v46_v18 = vld [vmem:[%s975_s0 + $0xc8] sm:$0xff] }
  0x10   :  { %v30_v19 = vld [vmem:[%s975_s0 + $0x48] sm:$0xff]  ;;  %v47_v20 = vld [vmem:[%s975_s0 + $0xd0] sm:$0xff]  ;;  %v48_v22 = vld [vmem:[%s975_s0 + $0xd8] sm:$0xff] }
  0x11   :  { %v31_v21 = vld [vmem:[%s975_s0 + $0x50] sm:$0xff]  ;;  %v32_v23 = vld [vmem:[%s975_s0 + $0x58] sm:$0xff]  ;;  %v49_v24 = vld [vmem:[%s975_s0 + $0xe0] sm:$0xff] }
  0x12   :  { %89 = vxpose.xlu0.b32.cont [5/16] (narrow) %v41_v8, 32  ;;  %v33_v25 = vld [vmem:[%s975_s0 + $0x60] sm:$0xff]  ;;  %v50_v26 = vld [vmem:[%s975_s0 + $0xe8] sm:$0xff]  ;;  %v51_v28 = vld [vmem:[%s975_s0 + $0xf0] sm:$0xff] }
  0x13   :  { %57 = vxpose.xlu1.b32.cont [5/16] (narrow) %v25_v9, 32  ;;  %v34_v27 = vld [vmem:[%s975_s0 + $0x68] sm:$0xff]  ;;  %v35_v29 = vld [vmem:[%s975_s0 + $0x70] sm:$0xff]  ;;  %v52_v30 = vld [vmem:[%s975_s0 + $0xf8] sm:$0xff] }
  0x14   :  { %v36_v31 = vld [vmem:[%s975_s0 + $0x78] sm:$0xff]  ;;  %v886_v33 = vld [vmem:[%s979_s4 + $0x8] sm:$0xff]  ;;  %v892_v35 = vld [vmem:[%s979_s4 + $0x10] sm:$0xff] }
  0x15   :  { %v898_v36 = vld [vmem:[%s979_s4 + $0x18] sm:$0xff]  ;;  %v903_v37 = vld [vmem:[%s979_s4] sm:$0xff] }
  0x16   :  { %90 = vxpose.xlu0.b32.cont [6/16] (narrow) %v42_v10, 32 }
  0x17   :  { %58 = vxpose.xlu1.b32.cont [6/16] (narrow) %v26_v11, 32 }
  0x1a   :  { %91 = vxpose.xlu0.b32.cont [7/16] (narrow) %v43_v12, 32 }
  0x1b   :  { %59 = vxpose.xlu1.b32.cont [7/16] (narrow) %v27_v13, 32 }
  0x1e   :  { %92 = vxpose.xlu0.b32.cont [8/16] (narrow) %v44_v14, 32 }
  0x1f   :  { %60 = vxpose.xlu1.b32.cont [8/16] (narrow) %v28_v15, 32 }
  0x22   :  { %93 = vxpose.xlu0.b32.cont [9/16] (narrow) %v45_v16, 32 }
  0x23   :  { %61 = vxpose.xlu1.b32.cont [9/16] (narrow) %v29_v17, 32 }
  0x26   :  { %94 = vxpose.xlu0.b32.cont [10/16] (narrow) %v46_v18, 32 }
  0x27   :  { %62 = vxpose.xlu1.b32.cont [10/16] (narrow) %v30_v19, 32 }
  0x2a   :  { %95 = vxpose.xlu0.b32.cont [11/16] (narrow) %v47_v20, 32 }
  0x2b   :  { %63 = vxpose.xlu1.b32.cont [11/16] (narrow) %v31_v21, 32 }
  0x2e   :  { %96 = vxpose.xlu0.b32.cont [12/16] (narrow) %v48_v22, 32 }
  0x2f   :  { %64 = vxpose.xlu1.b32.cont [12/16] (narrow) %v32_v23, 32 }
  0x32   :  { %97 = vxpose.xlu0.b32.cont [13/16] (narrow) %v49_v24, 32 }
  0x33   :  { %65 = vxpose.xlu1.b32.cont [13/16] (narrow) %v33_v25, 32 }
  0x36   :  { %98 = vxpose.xlu0.b32.cont [14/16] (narrow) %v50_v26, 32 }
  0x37   :  { %66 = vxpose.xlu1.b32.cont [14/16] (narrow) %v34_v27, 32 }
  0x3a   :  { %99 = vxpose.xlu0.b32.cont [15/16] (narrow) %v51_v28, 32 }
  0x3b   :  { %67 = vxpose.xlu1.b32.cont [15/16] (narrow) %v35_v29, 32 }
  0x3e   :  { %100 = vxpose.xlu0.b32.end [16/16] (narrow) %v52_v30, 32 }
  0x3f   :  { %68 = vxpose.xlu1.b32.end [16/16] (narrow) %v36_v31, 32 }
  0x5d   :  { %701 = vset.pattern.permute.xlu1 %v749_v34 }
  0x5e   :  { %201 = vperm.xlu1 %701, %v886_v33  }
  0x62   :  { %206 = vperm.xlu1 %701, %v892_v35  }
  0x66   :  { %211 = vperm.xlu1 %701, %v898_v36  }
  0x67   :  { %700 = vset.pattern.permute.xlu0 %v749_v34 }
  0x68   :  { %196 = vperm.xlu0 %700, %v903_v37  }
  0x82   :  { %v101_v38 = vpop.trf.xlu0 }
  0x83   :  { %v69_v39 = vpop.trf.xlu1 }
  0x86   :  { %v102_v40 = vpop.trf.xlu0 }
  0x87   :  { %v70_v41 = vpop.trf.xlu1  ;;  %v126_v44 = vadd.f32 %v102_v40, %v101_v38 }
  0x88   :  { %v117_v45 = vadd.f32 %v70_v41, %v69_v39 }
  0x8a   :  { %v103_v42 = vpop.trf.xlu0 }
  0x8b   :  { %v71_v43 = vpop.trf.xlu1  ;;  %v127_v46 = vadd.f32 %v126_v44, %v103_v42 }
  0x8c   :  { %v118_v47 = vadd.f32 %v117_v45, %v71_v43 }
  0x8e   :  { %v104_v48 = vpop.trf.xlu0 }
  0x8f   :  { %v72_v49 = vpop.trf.xlu1  ;;  %v128_v50 = vadd.f32 %v127_v46, %v104_v48 }
  0x90   :  { %v119_v51 = vadd.f32 %v118_v47, %v72_v49 }
  0x91   :  { %v129_v52 = vrot.slane %v128_v50, 4 }
  0x92   :  { %v120_v53 = vrot.slane %v119_v51, 4 }
  0x93   :  { %v130_v54 = vadd.f32 %v129_v52, %v128_v50 }
  0x94   :  { %v121_v55 = vadd.f32 %v120_v53, %v119_v51 }
  0x95   :  { %v131_v56 = vrot.slane %v130_v54, 2 }
  0x96   :  { %v122_v57 = vrot.slane %v121_v55, 2 }
  0x97   :  { %v132_v58 = vadd.f32 %v131_v56, %v130_v54 }
  0x98   :  { %v123_v59 = vadd.f32 %v122_v57, %v121_v55 }
  0x99   :  { %v133_v60 = vrot.slane %v132_v58, 1 }
  0x9a   :  { %v124_v61 = vrot.slane %v123_v59, 1 }
  0x9b   :  { %v134_v62 = vadd.f32 %v133_v60, %v132_v58  ;;  %v191_v60 = vld [vmem:[%s976_s1 + $0x8] sm:$0xff] }
  0x9c   :  { %v125_v63 = vadd.f32 %v124_v61, %v123_v59  ;;  %v190_v59 = vld [vmem:[%s976_s1] sm:$0xff]  ;;  %v192_v61 = vld [vmem:[%s976_s1 + $0x10] sm:$0xff] }
  0x9d   :  { %v137_v0 = vmul.f32 0.03125, %v134_v62  ;;  %v193_v62 = vld [vmem:[%s976_s1 + $0x18] sm:$0xff] }
  0x9e   :  { %v136_v1 = vmul.f32 0.03125, %v125_v63  ;;  %v750_v63 = vmov 1  }
  0x9f   :  { %v139_v2 = vsub.f32 %v101_v38, %v137_v0  ;;  %v141_v3 = vsub.f32 %v102_v40, %v137_v0  ;;  %v143_v4 = vsub.f32 %v103_v42, %v137_v0  ;;  %v145_v8 = vsub.f32 %v104_v48, %v137_v0  ;;  %702 = vset.pattern.permute.xlu1 %v750_v63 }
  0xa0   :  { %v138_v5 = vsub.f32 %v69_v39, %v136_v1  ;;  %v140_v6 = vsub.f32 %v70_v41, %v136_v1  ;;  %v142_v7 = vsub.f32 %v71_v43, %v136_v1  ;;  %v144_v11 = vsub.f32 %v72_v49, %v136_v1  ;;  %703 = vset.pattern.permute.xlu0 %v750_v63 }
  0xa1   :  { %v147_v9 = vmul.f32 %v139_v2, %v139_v2  ;;  %v149_v10 = vmul.f32 %v141_v3, %v141_v3  ;;  %v151_v14 = vmul.f32 %v143_v4, %v143_v4  ;;  %v153_v18 = vmul.f32 %v145_v8, %v145_v8  ;;  %329 = vperm.xlu1 %702, %v903_v37  }
  0xa2   :  { %v146_v12 = vmul.f32 %v138_v5, %v138_v5  ;;  %v148_v13 = vmul.f32 %v140_v6, %v140_v6  ;;  %v150_v16 = vmul.f32 %v142_v7, %v142_v7  ;;  %v152_v20 = vmul.f32 %v144_v11, %v144_v11  ;;  %333 = vperm.xlu0 %703, %v886_v33  }
  0xa3   :  { %v163_v15 = vadd.f32 %v149_v10, %v147_v9 }
  0xa4   :  { %v154_v17 = vadd.f32 %v148_v13, %v146_v12 }
  0xa5   :  { %v164_v19 = vadd.f32 %v163_v15, %v151_v14  ;;  %337 = vperm.xlu1 %702, %v892_v35  }
  0xa6   :  { %v155_v21 = vadd.f32 %v154_v17, %v150_v16 }
  0xa7   :  { %v165_v22 = vadd.f32 %v164_v19, %v153_v18 }
  0xa8   :  { %v156_v23 = vadd.f32 %v155_v21, %v152_v20 }
  0xa9   :  { %v166_v24 = vrot.slane %v165_v22, 4  ;;  %341 = vperm.xlu1 %702, %v898_v36  }
  0xaa   :  { %v157_v25 = vrot.slane %v156_v23, 4 }
  0xab   :  { %v167_v26 = vadd.f32 %v166_v24, %v165_v22 }
  0xac   :  { %v158_v27 = vadd.f32 %v157_v25, %v156_v23 }
  0xad   :  { %v168_v28 = vrot.slane %v167_v26, 2 }
  0xae   :  { %v159_v29 = vrot.slane %v158_v27, 2 }
  0xaf   :  { %v169_v30 = vadd.f32 %v168_v28, %v167_v26 }
  0xb0   :  { %v160_v31 = vadd.f32 %v159_v29, %v158_v27 }
  0xb1   :  { %v170_v34 = vrot.slane %v169_v30, 1 }
  0xb2   :  { %v161_v38 = vrot.slane %v160_v31, 1 }
  0xb3   :  { %v171_v39 = vadd.f32 %v170_v34, %v169_v30  ;;  %v324_v30 = vld [vmem:[%s977_s2] sm:$0xff]  ;;  %v326_v34 = vld [vmem:[%s977_s2 + $0x10] sm:$0xff] }
  0xb4   :  { %v162_v40 = vadd.f32 %v161_v38, %v160_v31  ;;  %v325_v31 = vld [vmem:[%s977_s2 + $0x8] sm:$0xff]  ;;  %v327_v38 = vld [vmem:[%s977_s2 + $0x18] sm:$0xff] }
  0xb5   :  { %v173_v41 = vmul.f32 0.03125, %v171_v39  ;;  %v751_v39 = vmov 2  }
  0xb6   :  { %v172_v42 = vmul.f32 0.03125, %v162_v40  ;;  %704 = vset.pattern.permute.xlu0 %v751_v39  ;;  %705 = vset.pattern.permute.xlu1 %v751_v39  ;;  %v752_v40 = vmov 3  }
  0xb7   :  { %v175_v43 = vadd.f32 1e-05, %v173_v41  ;;  %456 = vperm.xlu0 %704, %v903_v37   ;;  %460 = vperm.xlu1 %705, %v886_v33  }
  0xb8   :  { %v174_v44 = vadd.f32 1e-05, %v172_v42 }
  0xb9   :  { %708 = vrsqrt.f32 %v175_v43 }
  0xba   :  { %710 = vrsqrt.f32 %v174_v44 }
  0xbb   :  { %707 = vset.pattern.permute.xlu0 %v752_v40  ;;  %706 = vset.pattern.permute.xlu1 %v752_v40 }
  0xbc   :  { %597 = vperm.xlu0 %707, %v886_v33   ;;  %593 = vperm.xlu1 %706, %v903_v37  }
  0xc3   :  { %v709_v45 = vpop.eup %708 }
  0xc4   :  { %v711_v46 = vpop.eup %710  ;;  %v185_v47 = vmul.f32 %v709_v45, %v145_v8  ;;  %v179_v48 = vmul.f32 %v709_v45, %v139_v2  ;;  %v181_v49 = vmul.f32 %v709_v45, %v141_v3  ;;  %v183_v50 = vmul.f32 %v709_v45, %v143_v4 }
  0xc5   :  { %v178_v51 = vmul.f32 %v711_v46, %v138_v5  ;;  %v180_v52 = vmul.f32 %v711_v46, %v140_v6  ;;  %v184_v54 = vmul.f32 %v711_v46, %v144_v11  ;;  %v182_v56 = vmul.f32 %v711_v46, %v142_v7 }
  0xc6   :  { %v665_v53 = vpack.c.bf16 %v181_v49, %v179_v48  ;;  %v669_v57 = vpack.c.bf16 %v185_v47, %v183_v50 }
  0xc7   :  { %v667_v55 = vpack.c.bf16 %v180_v52, %v178_v51  ;;  %v671_v58 = vpack.c.bf16 %v184_v54, %v182_v56 }
  0xc8   :  { %666 = vmatprep.subr.bf16.mxu0 %v665_v53 }
  0xc9   :  { %668 = vmatpush1.bf16.msra.mxu0 %v667_v55 }
  0xca   :  { %670 = vmatprep.subr.bf16.mxu0 %v669_v57 }
  0xcd   :  { %672 = vmatpush1.bf16.msra.mxu0 %v671_v58 }
  0xd0   :  { %655 = vmatmul.mubr.msk.f32.vlgmr.msra.gmra.mrb[0].mxu0 %vm214_vm0, %v190_v59 }
  0xd1   :  { %297 = vmatprep.mubr.f32.mxu0 %v748_v32 }
  0xd4   :  { %656 = vmatmul.mubr.msk.f32.gmra.mrb[2].mxu0 %vm214_vm0, %v191_v60 }
  0xd5   :  { %303 = vmatprep.mubr.f32.mxu0 %v748_v32 }
  0xd8   :  { %657 = vmatmul.mubr.msk.f32.gmra.mrb[4].mxu0 %vm214_vm0, %v192_v61 }
  0xd9   :  { %309 = vmatprep.mubr.f32.mxu0 %v748_v32 }
  0xdc   :  { %658 = vmatmul.mubr.msk.f32.gmra.mrb[6].mxu0 %vm214_vm0, %v193_v62 }
  0xdd   :  { %533 = vmatprep.mubr.f32.mxu0 %v748_v32  ;;  %v202_v0 = vpop.permute.xlu1 %201 }
  0xe1   :  { %v207_v9 = vpop.permute.xlu1 %206 }
  0xe5   :  { %v212_v18 = vpop.permute.xlu1 %211 }
  0xe7   :  { %v197_v1 = vpop.permute.xlu0 %196 }
 0x120   :  { %v330_v41 = vpop.permute.xlu1 %329 }
 0x121   :  { %v334_v44 = vpop.permute.xlu0 %333 }
 0x124   :  { %v338_v49 = vpop.permute.xlu1 %337 }
 0x128   :  { %v342_v58 = vpop.permute.xlu1 %341 }
 0x1a3   :  { %v293_v2 = vpop.f32.mrb[0].mxu0 }
 0x1a4   :  { %v295_v3 = vpop.f32.mrb[1].mxu0  ;;  %v294_v4 = vadd.f32 %v293_v2, %v197_v1 }
 0x1a5   :  { %v296_v5 = vadd.f32 %v295_v3, %v197_v1 }
 0x1a6   :  { %v316_v11 = vmax.f32 %v294_v4, 0.0 }
 0x1a7   :  { %v299_v6 = vpop.f32.mrb[2].mxu0  ;;  %v317_v13 = vmax.f32 %v296_v5, 0.0 }
 0x1a8   :  { %v300_v7 = vadd.f32 %v299_v6, %v202_v0  ;;  %v301_v8 = vpop.f32.mrb[3].mxu0  ;;  %v453_v6 = vld [vmem:[%s978_s3] sm:$0xff] }
 0x1a9   :  { %v302_v10 = vadd.f32 %v301_v8, %v202_v0  ;;  %v457_v8 = vpop.permute.xlu0 %456 }
 0x1aa   :  { %v318_v12 = vmax.f32 %v300_v7, 0.0  ;;  %v454_v7 = vld [vmem:[%s978_s3 + $0x8] sm:$0xff]  ;;  %s754_s3 = smov [#allocation2]  }
 0x1ab   :  { %v319_v14 = vmax.f32 %v302_v10, 0.0  ;;  %v305_v15 = vpop.f32.mrb[4].mxu0  ;;  %s647_s6 = sshll.u32 %s754_s3, 4  ;;  %s648_s6 = int_to_ptr.vmem [resolvable:$true] %s647_s6 }
 0x1ac   :  { %v307_v16 = vpop.f32.mrb[5].mxu0  ;;  %v675_v35 = vpack.c.bf16 %v318_v12, %v316_v11  ;;  %v306_v36 = vadd.f32 %v305_v15, %v207_v9  ;;  %s724_s7 = scalar_lea.vmem %s648_s6, 32  ;;  %p729_p1 = scmp.lt.s32.totalorder %s648_s6, %s648_s6 }
 0x1ad   :  { %v673_v17 = vpack.c.bf16 %v319_v14, %v317_v13  ;;  %v308_v19 = vadd.f32 %v307_v16, %v207_v9  ;;  %v461_v9 = vpop.permute.xlu1 %460  ;;  %p725_p0 = scmp.ne.s32.totalorder %s648_s6, %s724_s7  ;;  %p730_p2 = scmp.lt.s32.totalorder %s724_s7, %s724_s7 }
 0x1ae   :  { %v320_v24 = vmax.f32 %v306_v36, 0.0 }
 0x1af   :  { %v311_v20 = vpop.f32.mrb[6].mxu0  ;;  %674 = vmatprep.subr.bf16.mxu1 %v673_v17  ;;  %v321_v26 = vmax.f32 %v308_v19, 0.0  ;;  %p731_p3 = por %p730_p2, %p729_p1 }
 0x1b0   :  { %v312_v21 = vadd.f32 %v311_v20, %v212_v18  ;;  %v313_v22 = vpop.f32.mrb[7].mxu0  ;;  %676 = vmatpush1.bf16.msra.mxu1 %v675_v35 }
 0x1b1   :  { %v314_v23 = vadd.f32 %v313_v22, %v212_v18  ;;  %p732_p4 = pnand %p731_p3, %p725_p0 }
 0x1b2   :  { %v322_v25 = vmax.f32 %v312_v21, 0.0 }
 0x1b3   :  { %v323_v27 = vmax.f32 %v314_v23, 0.0 }
 0x1b4   :  { %v679_v28 = vpack.c.bf16 %v322_v25, %v320_v24 }
 0x1b5   :  { %v677_v29 = vpack.c.bf16 %v323_v27, %v321_v26 }
 0x1b7   :  { %678 = vmatprep.subr.bf16.mxu1 %v677_v29 }
 0x1b8   :  { %680 = vmatpush1.bf16.msra.mxu1 %v679_v28 }
 0x1bb   :  { %659 = vmatmul.mubr.msk.f32.vlgmr.msra.gmra.mrb[0].mxu1 %vm214_vm0, %v324_v30 }
 0x1bc   :  { %426 = vmatprep.mubr.f32.mxu1 %v748_v32 }
 0x1bf   :  { %660 = vmatmul.mubr.msk.f32.gmra.mrb[2].mxu1 %vm214_vm0, %v325_v31 }
 0x1c0   :  { %432 = vmatprep.mubr.f32.mxu1 %v748_v32 }
 0x1c3   :  { %661 = vmatmul.mubr.msk.f32.gmra.mrb[4].mxu1 %vm214_vm0, %v326_v34 }
 0x1c4   :  { %438 = vmatprep.mubr.f32.mxu1 %v748_v32 }
 0x1c7   :  { %662 = vmatmul.mubr.msk.f32.gmra.mrb[6].mxu1 %vm214_vm0, %v327_v38 }
 0x1c8   :  { %539 = vmatprep.mubr.f32.mxu1 %v748_v32 }
 0x28e   :  { %v422_v42 = vpop.f32.mrb[0].mxu1 }
 0x28f   :  { %v424_v43 = vpop.f32.mrb[1].mxu1  ;;  %v423_v45 = vadd.f32 %v422_v42, %v330_v41 }
 0x290   :  { %v425_v32 = vadd.f32 %v424_v43, %v330_v41 }
 0x291   :  { %v445_v51 = vmax.f32 %v423_v45, 0.0 }
 0x292   :  { %v428_v46 = vpop.f32.mrb[2].mxu1  ;;  %v446_v53 = vmax.f32 %v425_v32, 0.0 }
 0x293   :  { %v429_v47 = vadd.f32 %v428_v46, %v334_v44  ;;  %v430_v48 = vpop.f32.mrb[3].mxu1 }
 0x294   :  { %v431_v50 = vadd.f32 %v430_v48, %v334_v44 }
 0x295   :  { %v447_v52 = vmax.f32 %v429_v47, 0.0 }
 0x296   :  { %v448_v54 = vmax.f32 %v431_v50, 0.0  ;;  %v434_v55 = vpop.f32.mrb[4].mxu1 }
 0x297   :  { %v683_v56 = vpack.c.bf16 %v447_v52, %v445_v51  ;;  %v436_v33 = vpop.f32.mrb[5].mxu1  ;;  %v435_v37 = vadd.f32 %v434_v55, %v338_v49 }
 0x298   :  { %v681_v57 = vpack.c.bf16 %v448_v54, %v446_v53  ;;  %v437_v59 = vadd.f32 %v436_v33, %v338_v49 }
 0x299   :  { %v449_v0 = vmax.f32 %v435_v37, 0.0 }
 0x29a   :  { %v440_v60 = vpop.f32.mrb[6].mxu1  ;;  %682 = vmatprep.subr.bf16.mxu0 %v681_v57  ;;  %689 = vmatprep.subr.bf16.mxu1 %v681_v57  ;;  %v450_v2 = vmax.f32 %v437_v59, 0.0  ;;  %v598_v59 = vpop.permute.xlu0 %597 }
 0x29b   :  { %v441_v61 = vadd.f32 %v440_v60, %v342_v58  ;;  %v442_v62 = vpop.f32.mrb[7].mxu1  ;;  %684 = vmatpush1.bf16.msra.mxu0 %v683_v56  ;;  %691 = vmatpush1.bf16.msra.mxu1 %v683_v56  ;;  %v594_v60 = vpop.permute.xlu1 %593 }
 0x29c   :  { %v443_v63 = vadd.f32 %v442_v62, %v342_v58 }
 0x29d   :  { %v451_v1 = vmax.f32 %v441_v61, 0.0 }
 0x29e   :  { %v452_v3 = vmax.f32 %v443_v63, 0.0 }
 0x29f   :  { %v687_v4 = vpack.c.bf16 %v451_v1, %v449_v0 }
 0x2a0   :  { %v685_v5 = vpack.c.bf16 %v452_v3, %v450_v2 }
 0x2a2   :  { %686 = vmatprep.subr.bf16.mxu0 %v685_v5  ;;  %690 = vmatprep.subr.bf16.mxu1 %v685_v5 }
 0x2a3   :  { %688 = vmatpush1.bf16.msra.mxu0 %v687_v4  ;;  %692 = vmatpush1.bf16.msra.mxu1 %v687_v4 }
 0x2a6   :  { %663 = vmatmul.mubr.msk.f32.vlgmr.msra.gmra.mrb[8].mxu0 %vm214_vm0, %v453_v6  ;;  %664 = vmatmul.mubr.msk.f32.vlgmr.msra.gmra.mrb[8].mxu1 %vm214_vm0, %v454_v7 }
 0x379   :  { %v535_v10 = vpop.f32.mrb[8].mxu0  ;;  %v541_v11 = vpop.f32.mrb[8].mxu1 }
 0x37a   :  { %v536_v12 = vadd.f32 %v535_v10, %v457_v8  ;;  %v542_v13 = vadd.f32 %v541_v11, %v461_v9  ;;  %v537_v14 = vpop.f32.mrb[9].mxu0  ;;  %v543_v15 = vpop.f32.mrb[9].mxu1 }
 0x37b   :  { %v538_v16 = vadd.f32 %v537_v14, %v457_v8  ;;  %v544_v35 = vadd.f32 %v543_v15, %v461_v9  ;;  %v624_v15 = vlaneseq }
 0x37c   :  { %v546_v17 = vmax.f32 %v536_v12, %v542_v13 }
 0x37d   :  { %v553_v36 = vmax.f32 %v538_v16, %v544_v35  ;;  %vm638_vm1 = vcmp.lt.s32.totalorder %v624_v15, 256 }
 0x37e   :  { %v547_v18 = vrot.slane %v546_v17, 4 }
 0x37f   :  { %v554_v19 = vrot.slane %v553_v36, 4 }
 0x380   :  { %v548_v20 = vmax.f32 %v546_v17, %v547_v18 }
 0x381   :  { %v555_v21 = vmax.f32 %v553_v36, %v554_v19  ;;  %v625_v19 = vshrl.u32 %v624_v15, 7 }
 0x382   :  { %v549_v22 = vrot.slane %v548_v20, 2 }
 0x383   :  { %v556_v23 = vrot.slane %v555_v21, 2 }
 0x384   :  { %v550_v24 = vmax.f32 %v548_v20, %v549_v22 }
 0x385   :  { %v557_v25 = vmax.f32 %v555_v21, %v556_v23 }
 0x386   :  { %v551_v26 = vrot.slane %v550_v24, 1 }
 0x387   :  { %v558_v27 = vrot.slane %v557_v25, 1 }
 0x388   :  { %v552_v28 = vmax.f32 %v550_v24, %v551_v26 }
 0x389   :  { %v559_v29 = vmax.f32 %v557_v25, %v558_v27 }
 0x38a   :  { %v560_v30 = vsub.f32 %v536_v12, %v552_v28  ;;  %v562_v31 = vsub.f32 %v542_v13, %v552_v28  ;;  %v753_v13 = vmov 1966171168  }
 0x38b   :  { %v561_v34 = vsub.f32 %v538_v16, %v559_v29  ;;  %v563_v38 = vsub.f32 %v544_v35, %v559_v29  ;;  %v622_v14 = vunpack.c.l.s4 %v753_v13 }
 0x38c   :  { %v564_v39 = vmul.f32 1.442695, %v560_v30  ;;  %v568_v40 = vmul.f32 1.442695, %v562_v31 }
 0x38d   :  { %v566_v41 = vmul.f32 1.442695, %v561_v34  ;;  %v570_v42 = vmul.f32 1.442695, %v563_v38  ;;  %v623_v18 = vunpack.c.0.s8 %v622_v14 }
 0x38e   :  { %712 = vpow2.f32 %v564_v39 }
 0x38f   :  { %714 = vpow2.f32 %v568_v40  ;;  %v626_v23 = vsub.s32 %v623_v18, %v625_v19 }
 0x390   :  { %716 = vpow2.f32 %v566_v41 }
 0x391   :  { %718 = vpow2.f32 %v570_v42 }
 0x398   :  { %v713_v43 = vpop.eup %712 }
 0x399   :  { %v715_v44 = vpop.eup %714 }
 0x39a   :  { %v717_v45 = vpop.eup %716  ;;  %v572_v32 = vadd.f32 %v715_v44, %v713_v43 }
 0x39b   :  { %v719_v46 = vpop.eup %718 }
 0x39c   :  { %v573_v47 = vrot.slane %v572_v32, 4  ;;  %v579_v48 = vadd.f32 %v719_v46, %v717_v45 }
 0x39e   :  { %v574_v49 = vadd.f32 %v573_v47, %v572_v32  ;;  %v580_v50 = vrot.slane %v579_v48, 4 }
 0x3a0   :  { %v581_v51 = vadd.f32 %v580_v50, %v579_v48  ;;  %v575_v52 = vrot.slane %v574_v49, 2 }
 0x3a2   :  { %v576_v53 = vadd.f32 %v575_v52, %v574_v49  ;;  %v582_v54 = vrot.slane %v581_v51, 2 }
 0x3a4   :  { %v577_v55 = vrot.slane %v576_v53, 1  ;;  %v583_v56 = vadd.f32 %v582_v54, %v581_v51 }
 0x3a6   :  { %v578_v33 = vadd.f32 %v577_v55, %v576_v53  ;;  %v584_v57 = vrot.slane %v583_v56, 1 }
 0x3a8   :  { %v585_v37 = vadd.f32 %v584_v57, %v583_v56  ;;  %720 = vrcp.f32 %v578_v33 }
 0x3aa   :  { %722 = vrcp.f32 %v585_v37 }
 0x3b2   :  { %v721_v58 = vpop.eup %720 }
 0x3b3   :  { %v590_v61 = vmul.f32 %v721_v58, %v715_v44  ;;  %v587_v62 = vmul.f32 %v721_v58, %v713_v43 }
 0x3b4   :  { %v723_v63 = vpop.eup %722 }
 0x3b5   :  { %v591_v0 = vmul.f32 %v723_v63, %v719_v46  ;;  %v602_v1 = vmul.f32 %v598_v59, %v590_v61  ;;  %v589_v2 = vmul.f32 %v723_v63, %v717_v45  ;;  %v600_v3 = vmul.f32 %v594_v60, %v587_v62 }
 0x3b7   :  { %v603_v4 = vmul.f32 %v598_v59, %v591_v0  ;;  %v601_v5 = vmul.f32 %v594_v60, %v589_v2  ;;  %v604_v6 = vadd.f32 %v602_v1, %v600_v3 }
 0x3b9   :  { %v605_v7 = vrot.slane %v604_v6, 4  ;;  %v611_v8 = vadd.f32 %v603_v4, %v601_v5 }
 0x3bb   :  { %v606_v9 = vadd.f32 %v605_v7, %v604_v6  ;;  %v612_v10 = vrot.slane %v611_v8, 4 }
 0x3bd   :  { %v607_v11 = vrot.slane %v606_v9, 2  ;;  %v613_v12 = vadd.f32 %v612_v10, %v611_v8 }
 0x3bf   :  { %v608_v16 = vadd.f32 %v607_v11, %v606_v9  ;;  %v614_v35 = vrot.slane %v613_v12, 2 }
 0x3c1   :  { %v609_v17 = vrot.slane %v608_v16, 1  ;;  %v615_v36 = vadd.f32 %v614_v35, %v613_v12 }
 0x3c3   :  { %v610_v20 = vadd.f32 %v609_v17, %v608_v16  ;;  %v616_v21 = vrot.slane %v615_v36, 1 }
 0x3c5   :  { %v617_v22 = vadd.f32 %v616_v21, %v615_v36 }
 0x3c7   :  { %v620_v24 = vcombine.low %v610_v20, %v617_v22 }
 0x3c9   :  { %v627_v25 = vrot.slane %v620_v24, %v626_v23 }
 0x3cb   :  { %v634_v26 = vrot.slane %v627_v25, %v626_v23 }
 0x3cd   :  { %640 = vst.msk [vmem:[#allocation2] sm:$0x3] %vm638_vm1, %v634_v26 }
 0x3ce   :  { %735 = shalt.err (!%p732_p4)
}
 0x3cf   :  { %s736_s10 = scalar_lea.hbm %s980_s5, 32 }
 0x3d0   :  { %p737_p5 = scmp.ne.s32.totalorder %s980_s5, %s736_s10  ;;  %p740_p6 = scmp.lt.u32.totalorder %s736_s10, %s980_s5 }
 0x3d2   :  { %p742_p7 = pnand %p740_p6, %p737_p5 }
 0x3d4   :  { %745 = shalt.err (!%p742_p7)
}
 0x3d5   :  { %650 = dma.vmem_to_hbm [thread:$0]  %s648_s6, 32, %s980_s5, [#allocation3]  }
 0x3d6   :  { %746 = dma.done.wait [#allocation3], 32  }
 0x3d7   :  { %747 = vsyncadd [#allocation3], 4294967264 }
 0x3d8   :  { %654 = vsyncpa [#allocation3], 1 }

</bundles_post_ra>
